<compile_context>
chip_gen: v7x
topology: tpu7x:2x2x1
jax: 0.10.0
libtpu: 0.0.40
codegen_flags: <defaults>
</compile_context>

<pallas_src>
import math
import jax
import jax.numpy as jnp
from jax.experimental import pallas as pl
from jax.experimental.pallas import tpu as pltpu


def _round_up(x, m):
    return ((x + m - 1) // m) * m


def _cdiv(a, b):
    return -(-a // b)


def motion_decoder_kernel(x_ref, sb_ref, w1t_ref, w2t_ref, b2_ref, out_ref):
    # x_ref:   (1, TNf, D)  streamed rows of gen_viseme_feat (input dtype)
    # sb_ref:  (1, 1, D)    f32 per-batch folded bias = style_emb @ W1^T + b1
    # w1t_ref: (D, D)       W1^T, resident constant block (input dtype)
    # w2t_ref: (D, O)       W2^T, resident constant block (input dtype)
    # b2_ref:  (1, O)       f32 final bias, resident constant block
    # out_ref: (1, TNf, O)  output rows (input dtype)
    cd = w1t_ref.dtype
    h = jnp.dot(x_ref[0], w1t_ref[...], preferred_element_type=jnp.float32)
    h = h + sb_ref[0]                             # (TNf,D) + (1,D), f32
    h = jnp.maximum(h, jnp.float32(0.01) * h)     # LeakyReLU(0.01), f32 on VPU
    y = jnp.dot(h.astype(cd), w2t_ref[...], preferred_element_type=jnp.float32)
    out_ref[0] = (y + b2_ref[...]).astype(out_ref.dtype)


def motion_decoder_forward(gen_viseme_feat, style_emb, w1, b1, w2, b2):
    """gen_viseme_feat: (Bs, Nf, D); style_emb: (Bs, 1, D).
    w1: (D, D), b1: (D,), w2: (O, D), b2: (O,)  (PyTorch Linear layout).
    Streams gen/weights in gen_viseme_feat.dtype (use bf16 inputs for bf16
    HBM traffic + MXU bf16 path); accumulation/bias/activation stay f32."""
    Bs, Nf, D = gen_viseme_feat.shape
    O = w2.shape[0]
    dtype = gen_viseme_feat.dtype
    itemsize = jnp.dtype(dtype).itemsize
    f32 = jnp.float32

    # ---- row-tile selection along Nf ----
    TNF_MAX = 2048                       # big tile: amortize ~0.35us/step
    TNf = Nf if Nf <= TNF_MAX else TNF_MAX
    # v7x megacore: guarantee >=2 grid steps when Bs == 1 so both TCs get work
    if Bs == 1 and Nf > 8 and _cdiv(Nf, TNf) < 2:
        TNf = _round_up(_cdiv(Nf, 2), 8)
    Nf_p = _round_up(Nf, TNf)
    if Nf_p != Nf:                       # only pad Nf when it must be split
        gen_viseme_feat = jnp.pad(gen_viseme_feat,
                                  ((0, 0), (0, Nf_p - Nf), (0, 0)))

    # ---- tiny resident operands (no full-size bias stream, no lane padding) ----
    # Fold: (gen + style) @ W1^T + b1 == gen @ W1^T + (style @ W1^T + b1)
    style_bias = (jnp.squeeze(style_emb, 1).astype(f32) @ w1.T.astype(f32)
                  + b1.astype(f32)).reshape(Bs, 1, D)          # (Bs,1,D) f32
    w1t = w1.T.astype(dtype)                                   # (D, D)
    w2t = w2.T.astype(dtype)                                   # (D, O)
    b2_r = b2.astype(f32).reshape(1, O)                        # (1, O)

    M = Bs * Nf
    cost = pl.CostEstimate(
        flops=2 * M * (D * D + D * O),
        transcendentals=0,
        bytes_accessed=int(Bs * Nf_p * (D + O) * itemsize
                           + (D * D + D * O) * itemsize
                           + (Bs * D + O) * 4),
    )

    grid = (Bs, Nf_p // TNf)
    out = pl.pallas_call(
        motion_decoder_kernel,
        out_shape=jax.ShapeDtypeStruct((Bs, Nf_p, O), dtype),
        grid_spec=pltpu.PrefetchScalarGridSpec(
            num_scalar_prefetch=0,
            grid=grid,
            in_specs=[
                pl.BlockSpec((1, TNf, D), lambda b, j: (b, j, 0)),  # gen rows
                pl.BlockSpec((1, 1, D), lambda b, j: (b, 0, 0)),    # style bias
                pl.BlockSpec((D, D), lambda b, j: (0, 0)),          # W1^T
                pl.BlockSpec((D, O), lambda b, j: (0, 0)),          # W2^T
                pl.BlockSpec((1, O), lambda b, j: (0, 0)),          # b2
            ],
            out_specs=pl.BlockSpec((1, TNf, O), lambda b, j: (b, j, 0)),
        ),
        compiler_params=pltpu.CompilerParams(
            dimension_semantics=("parallel", "parallel")),
        cost_estimate=cost,
    )(gen_viseme_feat, style_bias, w1t, w2t, b2_r)

    if Nf_p != Nf:
        out = out[:, :Nf, :]
    return out


def _xavier_uniform(key, shape):
    fan_out, fan_in = shape
    bound = math.sqrt(6.0 / (fan_in + fan_out))
    return jax.random.uniform(key, shape, jnp.float32, -bound, bound)


def _reference(gen, style, w1, b1, w2, b2):
    x = gen.astype(jnp.float32) + style.astype(jnp.float32)
    h = x @ w1.T + b1
    h = jnp.where(h > 0, h, 0.01 * h)
    return h @ w2.T + b2


if __name__ == "__main__":
    Bs, Nf, D, O = 2, 8, 32, 64

    key = jax.random.PRNGKey(0)
    k_gen, k_style, k_w1, k_w2 = jax.random.split(key, 4)

    gen_viseme_feat = jax.random.normal(k_gen, (Bs, Nf, D), jnp.float32)
    style_emb = jax.random.normal(k_style, (Bs, 1, D), jnp.float32)

    # Parameters (deterministic). Biases zero per reference init.
    w1 = _xavier_uniform(k_w1, (D, D))     # Linear(D, D).weight
    b1 = jnp.zeros((D,), jnp.float32)
    w2 = _xavier_uniform(k_w2, (O, D))     # final_out_layer Linear(D, O).weight
    b2 = jnp.zeros((O,), jnp.float32)

    # f32 streaming path: exact match vs. reference.
    out = motion_decoder_forward(gen_viseme_feat, style_emb, w1, b1, w2, b2)
    out = jax.block_until_ready(out)
    ref = _reference(gen_viseme_feat, style_emb, w1, b1, w2, b2)
    assert out.shape == (Bs, Nf, O)
    assert jnp.allclose(out, ref, atol=1e-4, rtol=1e-4)

    # bf16 streaming path (what a bf16 model would feed): halves HBM traffic,
    # MXU bf16 path, f32 accumulate/bias/activation inside the kernel.
    gen_bf = gen_viseme_feat.astype(jnp.bfloat16)
    style_bf = style_emb.astype(jnp.bfloat16)
    out_bf = jax.block_until_ready(
        motion_decoder_forward(gen_bf, style_bf, w1, b1, w2, b2))
    ref_bf = _reference(gen_bf, style_bf, w1, b1, w2, b2)
    assert out_bf.dtype == jnp.bfloat16
    assert jnp.allclose(out_bf.astype(jnp.float32), ref_bf,
                        atol=0.15, rtol=0.05)

    print("KERNEL_OK")
</pallas_src>

<mosaic_0001>
module attributes {stable_mosaic.version = 11 : i64} {
  func.func @motion_decoder_kernel(%arg0: i32, %arg1: i32, %arg2: memref<1x8x32xf32, #tpu.memory_space<vmem>>, %arg3: memref<1x1x32xf32, #tpu.memory_space<vmem>>, %arg4: memref<32x32xf32, #tpu.memory_space<vmem>>, %arg5: memref<32x64xf32, #tpu.memory_space<vmem>>, %arg6: memref<1x64xf32, #tpu.memory_space<vmem>>, %arg7: memref<1x8x64xf32, #tpu.memory_space<vmem>>) attributes {dimension_semantics = [#tpu.dimension_semantics<parallel>, #tpu.dimension_semantics<parallel>], iteration_bounds = array<i64: 2, 1>, scalar_prefetch = 0 : i64, scratch_operands = 0 : i64, tpu.core_type = #tpu.core_type<tc>, window_params = [{transform_indices = @transform_0, window_bounds = array<i64: 1, 8, 32>}, {transform_indices = @transform_1, window_bounds = array<i64: 1, 1, 32>}, {pipeline_mode = #tpu.pipeline_mode<synchronous>, transform_indices = @transform_2, window_bounds = array<i64: 32, 32>}, {pipeline_mode = #tpu.pipeline_mode<synchronous>, transform_indices = @transform_3, window_bounds = array<i64: 32, 64>}, {pipeline_mode = #tpu.pipeline_mode<synchronous>, transform_indices = @transform_4, window_bounds = array<i64: 1, 64>}, {transform_indices = @transform_5, window_bounds = array<i64: 1, 8, 64>}]} {
    %c0 = arith.constant 0 : index
    %c0_0 = arith.constant 0 : index
    %c0_1 = arith.constant 0 : index
    %0 = vector.load %arg2[%c0, %c0_0, %c0_1] : memref<1x8x32xf32, #tpu.memory_space<vmem>>, vector<1x8x32xf32>
    %1 = vector.shape_cast %0 : vector<1x8x32xf32> to vector<8x32xf32>
    %c0_2 = arith.constant 0 : index
    %c0_3 = arith.constant 0 : index
    %2 = vector.load %arg4[%c0_2, %c0_3] : memref<32x32xf32, #tpu.memory_space<vmem>>, vector<32x32xf32>
    %cst = arith.constant dense<0.000000e+00> : vector<8x32xf32>
    %3 = tpu.matmul %1, %2, %cst {dimension_numbers = #tpu.dot_dimension_numbers<[1], [0], [0], [1], [0, 0, 1, 1], [], []>} : vector<8x32xf32>, vector<32x32xf32>, vector<8x32xf32> -> vector<8x32xf32>
    %c0_4 = arith.constant 0 : index
    %c0_5 = arith.constant 0 : index
    %c0_6 = arith.constant 0 : index
    %4 = vector.load %arg3[%c0_4, %c0_5, %c0_6] : memref<1x1x32xf32, #tpu.memory_space<vmem>>, vector<1x1x32xf32>
    %5 = vector.shape_cast %4 : vector<1x1x32xf32> to vector<1x32xf32>
    %6 = vector.broadcast %5 : vector<1x32xf32> to vector<8x32xf32>
    %7 = arith.addf %3, %6 : vector<8x32xf32>
    %cst_7 = arith.constant 0.00999999977 : f32
    %8 = vector.broadcast %cst_7 : f32 to vector<8x32xf32>
    %9 = arith.mulf %8, %7 : vector<8x32xf32>
    %10 = arith.maximumf %7, %9 : vector<8x32xf32>
    %c0_8 = arith.constant 0 : index
    %c0_9 = arith.constant 0 : index
    %11 = vector.load %arg5[%c0_8, %c0_9] : memref<32x64xf32, #tpu.memory_space<vmem>>, vector<32x64xf32>
    %cst_10 = arith.constant dense<0.000000e+00> : vector<8x64xf32>
    %12 = tpu.matmul %10, %11, %cst_10 {dimension_numbers = #tpu.dot_dimension_numbers<[1], [0], [0], [1], [0, 0, 1, 1], [], []>} : vector<8x32xf32>, vector<32x64xf32>, vector<8x64xf32> -> vector<8x64xf32>
    %c0_11 = arith.constant 0 : index
    %c0_12 = arith.constant 0 : index
    %13 = vector.load %arg6[%c0_11, %c0_12] : memref<1x64xf32, #tpu.memory_space<vmem>>, vector<1x64xf32>
    %14 = vector.broadcast %13 : vector<1x64xf32> to vector<8x64xf32>
    %15 = arith.addf %12, %14 : vector<8x64xf32>
    %c0_13 = arith.constant 0 : index
    %c0_14 = arith.constant 0 : index
    %c0_15 = arith.constant 0 : index
    %16 = vector.load %arg7[%c0_13, %c0_14, %c0_15] : memref<1x8x64xf32, #tpu.memory_space<vmem>>, vector<1x8x64xf32>
    %17 = vector.shape_cast %16 : vector<1x8x64xf32> to vector<8x64xf32>
    %18 = vector.shape_cast %15 : vector<8x64xf32> to vector<1x8x64xf32>
    tpu.vector_store %arg7[%c0_13, %c0_14, %c0_15], %18 {strides = array<i32>} : memref<1x8x64xf32, #tpu.memory_space<vmem>>, vector<1x8x64xf32>,
    return
  }
  func.func @transform_0(%arg0: i32, %arg1: i32) -> (i32, i32, i32) {
    %c0_i32 = arith.constant 0 : i32
    %c0_i32_0 = arith.constant 0 : i32
    return %arg0, %arg1, %c0_i32 : i32, i32, i32
  }
  func.func @transform_1(%arg0: i32, %arg1: i32) -> (i32, i32, i32) {
    %c0_i32 = arith.constant 0 : i32
    %c0_i32_0 = arith.constant 0 : i32
    %c0_i32_1 = arith.constant 0 : i32
    return %arg0, %c0_i32, %c0_i32_0 : i32, i32, i32
  }
  func.func @transform_2(%arg0: i32, %arg1: i32) -> (i32, i32) {
    %c0_i32 = arith.constant 0 : i32
    %c0_i32_0 = arith.constant 0 : i32
    %c0_i32_1 = arith.constant 0 : i32
    return %c0_i32, %c0_i32_0 : i32, i32
  }
  func.func @transform_3(%arg0: i32, %arg1: i32) -> (i32, i32) {
    %c0_i32 = arith.constant 0 : i32
    %c0_i32_0 = arith.constant 0 : i32
    %c0_i32_1 = arith.constant 0 : i32
    return %c0_i32, %c0_i32_0 : i32, i32
  }
  func.func @transform_4(%arg0: i32, %arg1: i32) -> (i32, i32) {
    %c0_i32 = arith.constant 0 : i32
    %c0_i32_0 = arith.constant 0 : i32
    %c0_i32_1 = arith.constant 0 : i32
    return %c0_i32, %c0_i32_0 : i32, i32
  }
  func.func @transform_5(%arg0: i32, %arg1: i32) -> (i32, i32, i32) {
    %c0_i32 = arith.constant 0 : i32
    %c0_i32_0 = arith.constant 0 : i32
    return %arg0, %arg1, %c0_i32 : i32, i32, i32
  }
}

</mosaic_0001>

<bundles_post_ra>
// kernel: tpu_custom_call.1
= control target key start
LH: loop header
LB: loop body
LE: loop exit
PB: predicated region body
PF: predicated region fallthrough
CT: control target
= control target key end

     0   :  { %10 = vsyncpa [#allocation3], 0  ;;  %s1227_s0 = inlined_call_operand.hbm [shape: f32[2,8,32], index: 0, kind: input, shape index: {}]   ;;  %s1228_s1 = inlined_call_operand.vmem [shape: f32[2,1,32], index: 1, kind: input, shape index: {}]   ;;  %s1229_s2 = inlined_call_operand.hbm [shape: f32[32,32], index: 2, kind: input, shape index: {}]   ;;  %s1230_s3 = inlined_call_operand.hbm [shape: f32[32,64], index: 3, kind: input, shape index: {}]   ;;  %s1231_s4 = inlined_call_operand.vmem [shape: f32[1,64], index: 4, kind: input, shape index: {}]   ;;  %s1232_s5 = inlined_call_operand.hbm [shape: f32[2,8,64], index: 5, kind: output, shape index: {}]  }
   0x1   :  { %12 = vsyncpa [#allocation3 + $0x1], 0 }
   0x2   :  { %13 = vsyncpa [#allocation6], 0 }
   0x3   :  { %14 = vsyncpa [#allocation4], 0 }
   0x4   :  { %16 = vsyncpa [#allocation4 + $0x1], 0  ;;  %s963_s18 = smov 0   ;;  %s965_s19 = smov 0  }
   0x5   :  { %s967_s20 = smov 0   ;;  %s969_s21 = smov 0  }
   0x6   :  { %s971_s22 = smov 0   ;;  %s973_s23 = smov 0  }
   0x7 LB: > { %s597_s24 = sadd.s32 4294967295, %s922_s23   ;;  %s598_s25 = sadd.s32 4294967294, %s922_s23   ;;  %s922_s23 = sphi %s973_s23, %s22_s23   ;;  %s918_s22 = sphi %s971_s22, %s1254_s22   ;;  %s914_s21 = sphi %s969_s21, %s1253_s21   ;;  %s910_s20 = sphi %s967_s20, %s1252_s20   ;;  %s906_s19 = sphi %s965_s19, %s1251_s19   ;;  %s902_s18 = sphi %s963_s18, %s1250_s18  }
   0x8   : > { %p56_p0 = scmp.ne.s32.totalorder %s906_s19, %s902_s18  ;;  %p997_p1 = scmp.eq.s32.totalorder %s597_s24, 0 }
   0x9   : > { %p1001_p2 = scmp.eq.s32.totalorder %s597_s24, 1  ;;  %p177_p3 = scmp.eq.s32.totalorder %s598_s25, 1 }
   0xa   : > { %s1237_s26 = scalar_select %p997_p1, 1, 0 }
   0xb   : > { %p1007_p4 = por %p997_p1, %p56_p0  ;;  %p599_p5 = scmp.ge.s32.totalorder %s922_s23, 1 }
   0xc   : > { %p1012_p6 = por %p177_p3, %p56_p0  ;;  %p184_p7 = scmp.lt.s32.totalorder %s922_s23, 3 }
   0xd   : > { %s1239_s28 = scalar_select %p1007_p4, 1, 0 }
   0xe   : > { %s1240_s29 = scalar_select %p1012_p6, 1, 0 }
   0xf   : > { %p1017_p8 = pnand %p599_p5, %p184_p7  ;;  %s924_s6 = smov [#allocation5]  }
  0x10   : > { %s196_s7 = sshll.u32 %s924_s6, 4  ;;  %s925_s9 = smov [#allocation7]   ;;  %s1021_s7 = int_to_ptr.vmem [resolvable:$true] %s196_s7 }
  0x11   : > { %p674_p9 = pneg %p1017_p8  ;;  %s209_s10 = sshll.u32 %s925_s9, 4  ;;  %s1032_s10 = int_to_ptr.vmem [resolvable:$true] %s209_s10 }
  0x12   : > { %s750_s13 = scalar_lea.hbm %s1229_s2, 512 }
  0x13   : > { %p1028_p11 = pnand %p674_p9, %p997_p1  ;;  %p751_p12 = scmp.ne.s32.totalorder %s1229_s2, %s750_s13 }
  0x14   : > { %p757_p5 = scmp.lt.u32.totalorder %s750_s13, %s1229_s2 }
  0x15   : > { %p752_p13 = pneg %p1028_p11 }
  0x17   : > { %p753_p0 = pnand %p752_p13, %p751_p12 }
  0x19   : > { %p754_p3 = pneg %p753_p0 }
  0x1b   : > { %p759_p7 = pnand %p757_p5, %p754_p3 }
  0x1d   : > { %762 = shalt.err (!%p759_p7)
}
  0x1e   : > { %s763_s24 = scalar_lea.vmem %s1021_s7, 512  ;;  %p771_p1 = scmp.lt.s32.totalorder %s1021_s7, %s1021_s7 }
  0x1f   : > { %p764_p9 = scmp.ne.s32.totalorder %s1021_s7, %s763_s24  ;;  %p772_p12 = scmp.lt.s32.totalorder %s763_s24, %s763_s24 }
  0x21   : > { %p766_p10 = pnand %p764_p9, %p752_p13  ;;  %p773_p0 = por %p772_p12, %p771_p1 }
  0x23   : > { %p767_p6 = pneg %p766_p10 }
  0x25   : > { %p774_p4 = pnand %p773_p0, %p767_p6 }
  0x27   : > { %777 = shalt.err (!%p774_p4)
}
  0x28   : > { %s926_s25 = smov 128   ;;  %s927_s6 = smov 8  }
  0x29   : > { %677 = dma.hbm_to_vmem [thread:$0]  (!%p1028_p11), %s1229_s2, 512, %s1021_s7, [#allocation6], %s926_s25, %s926_s25, %s927_s6  }
  0x2a   : > { %s778_s14 = scalar_lea.hbm %s1230_s3, 512 }
  0x2b   : > { %p779_p1 = scmp.ne.s32.totalorder %s1230_s3, %s778_s14  ;;  %p785_p10 = scmp.lt.u32.totalorder %s778_s14, %s1230_s3 }
  0x2d   : > { %p781_p4 = pnand %p779_p1, %p752_p13 }
  0x2f   : > { %p782_p6 = pneg %p781_p4 }
  0x31   : > { %p787_p3 = pnand %p785_p10, %p782_p6 }
  0x33   : > { %790 = shalt.err (!%p787_p3)
}
  0x34   : > { %s791_s7 = scalar_lea.vmem %s1032_s10, 512  ;;  %p799_p12 = scmp.lt.s32.totalorder %s1032_s10, %s1032_s10 }
  0x35   : > { %p792_p5 = scmp.ne.s32.totalorder %s1032_s10, %s791_s7  ;;  %p800_p0 = scmp.lt.s32.totalorder %s791_s7, %s791_s7 }
  0x37   : > { %p794_p7 = pnand %p792_p5, %p752_p13  ;;  %p801_p1 = por %p800_p0, %p799_p12 }
  0x39   : > { %p795_p9 = pneg %p794_p7 }
  0x3b   : > { %p802_p4 = pnand %p801_p1, %p795_p9 }
  0x3d   : > { %805 = shalt.err (!%p802_p4)
}
  0x3e   : > { %680 = dma.hbm_to_vmem [thread:$0]  (!%p1028_p11), %s1230_s3, 512, %s1032_s10, [#allocation6], %s926_s25, %s926_s25, %s927_s6  }
  0x3f   : > { %s34_s12 = sadd.s32 1, %s918_s22  ;;  %s43_s13 = sadd.s32 1, %s910_s20 }
  0x40   : > { %p36_p13 = scmp.ge.s32.totalorder %s34_s12, 2  ;;  %p50_p6 = scmp.ne.s32.totalorder %s910_s20, %s906_s19 }
  0x41   : > { %p51_p10 = scmp.eq.s32.totalorder %s922_s23, 0  ;;  %p691_p3 = scmp.lt.s32.totalorder %s922_s23, 2 }
  0x42   : > { %s1256_s12 = smov (%p36_p13, %s34_s12), 0  ;;  %p1096_p7 = por %p1001_p2, %p50_p6 }
  0x43   : > { %p52_p5 = por %p51_p10, %p50_p6  ;;  %s38_s14 = ssub.s32 %s918_s22, %s1256_s12 }
  0x44   : > { %s1243_s8 = scalar_select %p1096_p7, 1, 0 }
  0x45   : > { %s226_s15 = sand.u32 1, %s910_s20   ;;  %p41_p9 = scmp.eq.s32.totalorder %s38_s14, 0 }
  0x46   : > { %s603_s10 = sshll.u32 %s226_s15, 3  ;;  %s604_s25 = sshll.u32 %s918_s22, 7 }
  0x47   : > { %s1105_s6 = scalar_select %p41_p9, %s910_s20, %s43_s13  }
  0x48   : > { %s1110_s24 = scalar_lea.hbm %s1227_s0, %s604_s25  ;;  %s230_s27 = scalar_lea.vmem [#allocation2], %s603_s10 }
  0x49   : > { %s238_s7 = sshll.u32 %s230_s27, 4  ;;  %p1114_p2 = pnand %p691_p3, %p52_p5  ;;  %s1118_s7 = int_to_ptr.vmem [resolvable:$true] %s238_s7 }
  0x4a   : > { %s227_s11 = scalar_lea.sflag [#allocation3], %s226_s15  ;;  %s806_s13 = scalar_lea.hbm %s1110_s24, 128 }
  0x4b   : > { %p807_p11 = scmp.ne.s32.totalorder %s1110_s24, %s806_s13  ;;  %p808_p12 = pneg %p1114_p2 }
  0x4c   : > { %s811_s25 = scalar_lea.hbm %s1227_s0, 256  ;;  %p812_p4 = scmp.lt.u32.totalorder %s1110_s24, %s1227_s0 }
  0x4d   : > { %p809_p0 = pnand %p808_p12, %p807_p11  ;;  %p813_p13 = scmp.lt.u32.totalorder %s811_s25, %s806_s13 }
  0x4e   : > { %p815_p10 = scmp.lt.u32.totalorder %s806_s13, %s1110_s24 }
  0x4f   : > { %p810_p1 = pneg %p809_p0  ;;  %p814_p6 = por %p813_p13, %p812_p4 }
  0x51   : > { %p816_p3 = por %p815_p10, %p814_p6 }
  0x53   : > { %p817_p5 = pnand %p816_p3, %p810_p1 }
  0x55   : > { %820 = shalt.err (!%p817_p5)
}
  0x56   : > { %s821_s15 = scalar_lea.vmem %s1118_s7, 128  ;;  %s928_s27 = smov [#allocation2]  }
  0x57   : > { %p822_p9 = scmp.ne.s32.totalorder %s1118_s7, %s821_s15  ;;  %s826_s14 = sshll.u32 %s928_s27, 4  ;;  %s827_s14 = int_to_ptr.vmem [resolvable:$false] %s826_s14 }
  0x58   : > { %s828_s10 = scalar_lea.vmem %s827_s14, 256  ;;  %p829_p7 = scmp.lt.s32.totalorder %s1118_s7, %s827_s14 }
  0x59   : > { %p824_p11 = pnand %p822_p9, %p808_p12  ;;  %p830_p4 = scmp.lt.s32.totalorder %s828_s10, %s821_s15 }
  0x5b   : > { %p825_p0 = pneg %p824_p11  ;;  %p831_p13 = por %p830_p4, %p829_p7 }
  0x5d   : > { %p832_p6 = pnand %p831_p13, %p825_p0 }
  0x5f   : > { %835 = shalt.err (!%p832_p6)
}
  0x60   : > { %684 = dma.hbm_to_vmem [thread:$0]  (!%p1114_p2), %s1110_s24, 128, %s1118_s7, %s227_s11  }
  0x61   : > { %253 = sbr.rel (%p1017_p8) target bundleno = 565 (0x235), region = 40  ;;  %s1148_s13 = sand.u32 (!%p1017_p8), 1, %s906_s19  }
  0x62   : > { %s606_s25 = sshll.u32 (!%p1017_p8), %s1148_s13, 3  ;;  %s256_s16 = scalar_lea.sflag (!%p1017_p8), [#allocation3], %s1148_s13 }
  0x63   : > { %s259_s17 = scalar_lea.vmem (!%p1017_p8), [#allocation2], %s606_s25  ;;  %p1245_p7 = scmp.ne.s32.totalorder (!%p1017_p8), %s1239_s28, 0 }
  0x68   : > { %889 = dma.done.wait (%p1245_p7), %s256_s16, 128  }
  0x69   : > { %891 = vsyncadd (%p1245_p7), %s256_s16, 4294967168  ;;  %p1246_p2 = scmp.ne.s32.totalorder %s1237_s26, 0 }
  0x6b   : > { %893 = dma.done.wait (%p1246_p2), [#allocation6], 1024  }
  0x6c   : > { %895 = vsyncadd (%p1246_p2), [#allocation6], 4294966272  ;;  %v929_v0 = vmov 0.0|0.0   ;;  %vm930_vm0 = vmmov 0   ;;  %v931_v1 = vmov 0.0   ;;  %v301_v2 = vld [vmem:[#allocation5] sm:$0xff] }
  0x6d   : > { %650 = vmatprep.subr.bf16.mxu0 %v929_v0  ;;  %636 = vmatprep.mubr.msk.f32.mxu0 %vm930_vm0, %v931_v1  ;;  %v302_v3 = vld [vmem:[#allocation5 + $0x8] sm:$0xff]  ;;  %v303_v4 = vld [vmem:[#allocation5 + $0x10] sm:$0xff]  ;;  %v304_v6 = vld [vmem:[#allocation5 + $0x18] sm:$0xff]  ;;  %vm312_vm1 = vcmask 261120   ;;  %p297_p8 = scmp.lt.s32.totalorder %s914_s21, 1  ;;  %s615_s11 = sshll.u32 %s914_s21, 7 }
  0x6e   : > { %656 = vmatprep.subr.bf16.mxu1 %v929_v0  ;;  %647 = vmatprep.mubr.msk.f32.mxu1 %vm930_vm0, %v931_v1  ;;  %v651_v5 = vpack.c.bf16 %v302_v3, %v301_v2  ;;  %v654_v7 = vpack.c.bf16 %v304_v6, %v303_v4  ;;  %v300_v8 = vld [vmem:[%s259_s17] sm:$0xff]  ;;  %v388_v9 = vld [vmem:[#allocation7] sm:$0xff]  ;;  %v389_v10 = vld [vmem:[#allocation7 + $0x8] sm:$0xff]  ;;  %s296_s15 = scalar_lea.vmem [#allocation8], %s606_s25  ;;  %vm472_vm2 = vcmask 523264   ;;  %s1178_s16 = scalar_lea.hbm %s1232_s5, %s615_s11 }
  0x6f   : > { %v657_v11 = vpack.c.bf16 %v389_v10, %v388_v9  ;;  %v390_v12 = vld [vmem:[#allocation7 + $0x10] sm:$0xff]  ;;  %v391_v13 = vld [vmem:[#allocation7 + $0x18] sm:$0xff]  ;;  %s298_s26 = scalar_select %p297_p8, %s914_s21, 1 }
  0x70   : > { %652 = vmatpush3.bf16.msra.mxu0 %v651_v5  ;;  %v660_v14 = vpack.c.bf16 %v391_v13, %v390_v12  ;;  %v612_v21 = vld [vmem:[%s1231_s4] ss:$0 sm:$0xff]  ;;  %s489_s27 = sshll.u32 %s296_s15, 4  ;;  %s475_s17 = scalar_lea.sflag [#allocation4], %s1148_s13  ;;  %s1180_s27 = int_to_ptr.vmem [resolvable:$true] %s489_s27 }
  0x71   : > { %653 = vmatprep.subr.bf16.mxu0 %v929_v0  ;;  %658 = vmatpush3.bf16.msra.mxu1 %v657_v11  ;;  %s299_s24 = scalar_lea.vmem %s1228_s1, %s298_s26  ;;  %s836_s21 = scalar_lea.vmem %s1180_s27, 128 }
  0x72   : > { %659 = vmatprep.subr.bf16.mxu1 %v929_v0  ;;  %v610_v15 = vld [vmem:[%s299_s24] ss:$0 sm:$0xff]  ;;  %p837_p12 = scmp.ne.s32.totalorder %s1180_s27, %s836_s21  ;;  %p1247_p1 = scmp.ne.s32.totalorder %s1243_s8, 0 }
  0x73   : > { %s932_s25 = smov [#allocation8]  }
  0x74   : > { %655 = vmatpush3.bf16.msra.mxu0 %v654_v7  ;;  %p838_p10 = pnand %p837_p12, %p1247_p1  ;;  %s840_s26 = sshll.u32 %s932_s25, 4  ;;  %s841_s26 = int_to_ptr.vmem [resolvable:$false] %s840_s26 }
  0x75   : > { %661 = vmatpush3.bf16.msra.mxu1 %v660_v14  ;;  %s842_s28 = scalar_lea.vmem %s841_s26, 256  ;;  %p843_p5 = scmp.lt.s32.totalorder %s1180_s27, %s841_s26 }
  0x76   : > { %p839_p3 = pneg %p838_p10  ;;  %p844_p9 = scmp.lt.s32.totalorder %s842_s28, %s836_s21 }
  0x77   : > { %637 = vmatmul.mubr.msk.f32.vlgmr.msra.gmra.mrb[0].mxu0 %vm312_vm1, %v300_v8 }
  0x78   : > { %p845_p11 = por %p844_p9, %p843_p5 }
  0x7a   : > { %p846_p0 = pnand %p845_p11, %p839_p3 }
 0x14a   : > { %v382_v16 = vpop.f32.mrb[0].mxu0 }
 0x14b   : > { %v383_v17 = vadd.f32 %v610_v15, %v382_v16  ;;  %v638_v18 = vpop.f32.mrb[1].mxu0 }
 0x14d   : > { %v386_v19 = vmul.f32 0.01, %v383_v17 }
 0x14f   : > { %v387_v20 = vmax.f32 %v383_v17, %v386_v19 }
 0x151   : > { %648 = vmatmul.mubr.msk.f32.vlgmr.msra.gmra.mrb[0].mxu1 %vm312_vm1, %v387_v20 }
 0x224   : > { %v468_v22 = vpop.f32.mrb[0].mxu1 }
 0x225   : > { %v469_v23 = vadd.f32 %v612_v21, %v468_v22  ;;  %v649_v24 = vpop.f32.mrb[1].mxu1 }
 0x227   : > { %473 = vst.msk [vmem:[%s296_s15] sm:$0xff] %vm472_vm2, %v469_v23 }
 0x228   : > { %849 = shalt.err (!%p846_p0)
}
 0x229   : > { %s850_s13 = scalar_lea.hbm %s1178_s16, 128  ;;  %s854_s7 = scalar_lea.hbm %s1232_s5, 256 }
 0x22a   : > { %p851_p4 = scmp.ne.s32.totalorder %s1178_s16, %s850_s13  ;;  %p855_p7 = scmp.lt.u32.totalorder %s1178_s16, %s1232_s5 }
 0x22b   : > { %p856_p2 = scmp.lt.u32.totalorder %s854_s7, %s850_s13  ;;  %p858_p12 = scmp.lt.u32.totalorder %s850_s13, %s1178_s16 }
 0x22c   : > { %p852_p13 = pnand %p851_p4, %p1247_p1 }
 0x22d   : > { %p857_p8 = por %p856_p2, %p855_p7 }
 0x22e   : > { %p853_p6 = pneg %p852_p13 }
 0x22f   : > { %p859_p10 = por %p858_p12, %p857_p8 }
 0x231   : > { %p860_p3 = pnand %p859_p10, %p853_p6 }
 0x233   : > { %863 = shalt.err (!%p860_p3)
}
 0x234   : > { %672 = dma.vmem_to_hbm [thread:$0]  (%p1247_p1), %s1180_s27, 128, %s1178_s16, %s475_s17  }
 0x235 PF: > { %s501_s15 = sand.u32 1, %s902_s18   ;;  %p1248_p5 = scmp.ne.s32.totalorder %s1240_s29, 0 }
 0x236   : > { %p1249_p9 = scmp.ge.s32.totalorder %s922_s23, 2  ;;  %s502_s14 = scalar_lea.sflag [#allocation4], %s501_s15 }
 0x238   : > { %p686_p11 = pnand %p1249_p9, %p1248_p5 }
 0x23a   : > { %897 = dma.done.wait (!%p686_p11), %s502_s14, 128  }
 0x23b   : > { %899 = vsyncadd (!%p686_p11), %s502_s14, 4294967168  ;;  %s22_s23 = sadd.s32 1, %s922_s23   ;;  %s1250_s18 = smov %s906_s19 }
 0x23c   : > { %p19_p0 = scmp.ge.s32.totalorder %s22_s23, 4   ;;  %s1251_s19 = smov %s910_s20 }
 0x23d   : > { %s1252_s20 = smov %s1105_s6  ;;  %s1253_s21 = smov %s918_s22 }
 0x23e   : > { %s1254_s22 = smov %s1256_s12  ;;  %21 = sbr.rel (!%p19_p0) target bundleno = 7 (0x7), region = 96 }
 0x245   :  { %507 = vsyncpa [#allocation3], 1 }
 0x246   :  { %509 = vsyncpa [#allocation3 + $0x1], 1 }
 0x247   :  { %510 = vsyncpa [#allocation6], 1 }
 0x248   :  { %511 = vsyncpa [#allocation4], 1 }
 0x249   :  { %513 = vsyncpa [#allocation4 + $0x1], 1 }

</bundles_post_ra>
